<compile_context>
chip_gen: v7x
topology: tpu7x:2x2x1
jax: 0.10.0
libtpu: 0.0.40
codegen_flags: <defaults>
</compile_context>

<pallas_src>
import jax
import jax.numpy as jnp
from jax.experimental import pallas as pl
from jax.experimental.pallas import tpu as pltpu

LANE = 128                     # lane width of the packed parameter slabs
HIDDEN = 32                    # Net uses 32-unit hidden layers
PARAM_DTYPE = jnp.bfloat16     # weights / streamed activations (MXU-native)


def _round_up(n, m):
    return ((n + m - 1) // m) * m


def net_kernel(x_ref, w_ref, b_ref, out_ref):
    """Fused A2C Net forward for one batch tile.

    x_ref  : [tb, s]        bf16 states (s = round_up(state_space, 8), zero-padded cols)
    w_ref  : [3, 128, 128]  bf16 packed weights: [0]=fc1, [1]=fc2, [2]=heads (critic|actor)
    b_ref  : [8, 128]       f32 packed biases : row0=fc1, row1=fc2, row2=heads
    out_ref: [tb, ow]       f32, col 0 = critic, cols 1..1+A = actor (ow = round_up(1+A, 8))

    Zero padding keeps the math exact: padded weight rows/cols and bias lanes
    are zero and relu(0)=0, so unused lanes stay identically zero.
    """
    s = x_ref.shape[-1]        # static, sublane-aligned state width
    ow = out_ref.shape[-1]     # static packed output width
    wdt = w_ref.dtype

    # fc1 + relu : (tb, s) @ (s, 128), bf16 MXU push, f32 accumulate
    h = jnp.dot(x_ref[...], w_ref[0, :s, :], preferred_element_type=jnp.float32)
    h = jnp.maximum(h + b_ref[0:1, :], 0.0)

    # fc2 + relu
    h = jnp.dot(h.astype(wdt), w_ref[1], preferred_element_type=jnp.float32)
    h = jnp.maximum(h + b_ref[1:2, :], 0.0)

    # fused heads: one MXU push for critic + actor; store only the ow real lanes
    y = jnp.dot(h.astype(wdt), w_ref[2], preferred_element_type=jnp.float32)
    y = y + b_ref[2:3, :]
    out_ref[...] = y[:, :ow].astype(out_ref.dtype)


def init_params(key, state_space, action_space, hidden=HIDDEN):
    """PyTorch-Linear-style uniform(-1/sqrt(fan_in), 1/sqrt(fan_in)) init.

    Weights stored as [in, out] (transposed vs nn.Linear.weight); biases [1, out].
    """
    def linear(k, fan_in, fan_out):
        kw, kb = jax.random.split(k)
        bound = 1.0 / jnp.sqrt(float(fan_in))
        w = jax.random.uniform(kw, (fan_in, fan_out), jnp.float32, -bound, bound)
        b = jax.random.uniform(kb, (1, fan_out), jnp.float32, -bound, bound)
        return w, b

    k1, k2, k3, k4 = jax.random.split(key, 4)
    w1, b1 = linear(k1, state_space, hidden)   # fc1
    w2, b2 = linear(k2, hidden, hidden)        # fc2
    wa, ba = linear(k3, hidden, action_space)  # actor
    wc, bc = linear(k4, hidden, 1)             # critic
    return (w1, b1, w2, b2, wa, ba, wc, bc)


def pack_params(params, state_space, action_space, hidden=HIDDEN):
    """Pack the 8 parameter tensors into two lane-dense slabs (done once)."""
    assert state_space <= LANE and hidden <= LANE and (1 + action_space) <= LANE
    w1, b1, w2, b2, wa, ba, wc, bc = params

    # critic FIRST, then actor (wrapper output slices must match this order)
    w_heads = jnp.concatenate([wc, wa], axis=1)   # [hidden, 1 + action_space]
    b_heads = jnp.concatenate([bc, ba], axis=1)   # [1, 1 + action_space]

    def pad_w(w):
        out = jnp.zeros((LANE, LANE), PARAM_DTYPE)
        return out.at[:w.shape[0], :w.shape[1]].set(w.astype(PARAM_DTYPE))

    def pad_b(b):
        out = jnp.zeros((LANE,), jnp.float32)
        return out.at[:b.shape[1]].set(b[0].astype(jnp.float32))

    w_pack = jnp.stack([pad_w(w1), pad_w(w2), pad_w(w_heads)], axis=0)  # [3,128,128] bf16
    b_pack = jnp.zeros((8, LANE), jnp.float32)
    b_pack = b_pack.at[0].set(pad_b(b1)).at[1].set(pad_b(b2)).at[2].set(pad_b(b_heads))
    return (w_pack, b_pack)


def _choose_tb(B):
    """Batch tile: multiple of 16 (bf16 sublane tile), ~1-2K rows for large B,
    and an even number (>=2) of grid steps so v7x can use both TensorCores."""
    b16 = _round_up(max(B, 1), 16)
    if b16 <= 256:
        return b16                                          # tiny batch: single step
    n_steps = max(2, 2 * ((b16 + 2 * 2048 - 1) // (2 * 2048)))   # even, >= 2
    return _round_up((b16 + n_steps - 1) // n_steps, 16)


def net_forward(x, packed, action_space, *, tb=None):
    """Wrapper mirroring Net.forward: returns (critic_output, actor_output)."""
    w_pack, b_pack = packed
    B, S = x.shape
    assert S <= LANE and (1 + action_space) <= LANE

    s_pad = _round_up(S, 8)                  # sublane-aligned state width (no 128-lane pad)
    out_w = _round_up(1 + action_space, 8)   # narrow packed output width

    if tb is None:
        tb = _choose_tb(B)
    b_pad = _round_up(B, tb)

    if (B, S) == (b_pad, s_pad):
        x_in = x.astype(PARAM_DTYPE)         # no padding pass needed
    else:
        x_in = jnp.zeros((b_pad, s_pad), PARAM_DTYPE).at[:B, :S].set(x.astype(PARAM_DTYPE))

    out = pl.pallas_call(
        net_kernel,
        out_shape=jax.ShapeDtypeStruct((b_pad, out_w), jnp.float32),
        grid=(b_pad // tb,),
        in_specs=[
            pl.BlockSpec((tb, s_pad), lambda i: (i, 0)),           # x streams over batch
            pl.BlockSpec((3, LANE, LANE), lambda i: (0, 0, 0)),    # weights: resident
            pl.BlockSpec((8, LANE), lambda i: (0, 0)),             # biases: resident
        ],
        out_specs=pl.BlockSpec((tb, out_w), lambda i: (i, 0)),
        compiler_params=pltpu.CompilerParams(
            dimension_semantics=("parallel",)),
    )(x_in, w_pack, b_pack)

    critic = out[:B, 0:1]
    actor = out[:B, 1:1 + action_space]
    return critic, actor


def net_forward_ref(x, params):
    """Pure-JAX f32 reference for correctness checking (unpacked params)."""
    w1, b1, w2, b2, wa, ba, wc, bc = params
    h = jnp.maximum(x @ w1 + b1, 0.0)
    h = jnp.maximum(h @ w2 + b2, 0.0)
    return h @ wc + bc, h @ wa + ba


if __name__ == "__main__":
    key = jax.random.PRNGKey(0)
    kx, kp, kx2 = jax.random.split(key, 3)

    state_space = 16
    action_space = 4

    params = init_params(kp, state_space, action_space)
    packed = pack_params(params, state_space, action_space)

    # --- small-batch path (typical RL rollout step) ---
    batch = 8
    x = jax.random.normal(kx, (batch, state_space), jnp.float32)
    critic_out, actor_out = net_forward(x, packed, action_space)
    critic_out, actor_out = jax.block_until_ready((critic_out, actor_out))

    critic_ref, actor_ref = net_forward_ref(x, params)
    assert critic_out.shape == (batch, 1)
    assert actor_out.shape == (batch, action_space)
    # bf16 weights/activations (f32 accumulation) -> loosened tolerance vs f32 ref
    assert jnp.allclose(critic_out, critic_ref, atol=3e-2, rtol=3e-2)
    assert jnp.allclose(actor_out, actor_ref, atol=3e-2, rtol=3e-2)

    # --- multi-step grid path (exercises batch tiling + padded rows) ---
    batch2 = 300
    x2 = jax.random.normal(kx2, (batch2, state_space), jnp.float32)
    c2, a2 = net_forward(x2, packed, action_space)
    c2, a2 = jax.block_until_ready((c2, a2))
    c2_ref, a2_ref = net_forward_ref(x2, params)
    assert c2.shape == (batch2, 1) and a2.shape == (batch2, action_space)
    assert jnp.allclose(c2, c2_ref, atol=3e-2, rtol=3e-2)
    assert jnp.allclose(a2, a2_ref, atol=3e-2, rtol=3e-2)

    print("KERNEL_OK")
</pallas_src>

<mosaic_0001>
module attributes {stable_mosaic.version = 11 : i64} {
  func.func @net_kernel(%arg0: i32, %arg1: memref<16x16xbf16, #tpu.memory_space<vmem>>, %arg2: memref<3x128x128xbf16, #tpu.memory_space<vmem>>, %arg3: memref<8x128xf32, #tpu.memory_space<vmem>>, %arg4: memref<16x8xf32, #tpu.memory_space<vmem>>) attributes {dimension_semantics = [#tpu.dimension_semantics<parallel>], iteration_bounds = array<i64: 1>, scalar_prefetch = 0 : i64, scratch_operands = 0 : i64, tpu.core_type = #tpu.core_type<tc>, window_params = [{transform_indices = @transform_0, window_bounds = array<i64: 16, 16>}, {pipeline_mode = #tpu.pipeline_mode<synchronous>, transform_indices = @transform_1, window_bounds = array<i64: 3, 128, 128>}, {pipeline_mode = #tpu.pipeline_mode<synchronous>, transform_indices = @transform_2, window_bounds = array<i64: 8, 128>}, {transform_indices = @transform_3, window_bounds = array<i64: 16, 8>}]} {
    %c0 = arith.constant 0 : index
    %c0_0 = arith.constant 0 : index
    %0 = vector.load %arg1[%c0, %c0_0] : memref<16x16xbf16, #tpu.memory_space<vmem>>, vector<16x16xbf16>
    %c0_1 = arith.constant 0 : index
    %c0_2 = arith.constant 0 : index
    %c0_3 = arith.constant 0 : index
    %1 = vector.load %arg2[%c0_1, %c0_2, %c0_3] : memref<3x128x128xbf16, #tpu.memory_space<vmem>>, vector<1x16x128xbf16>
    %2 = vector.shape_cast %1 : vector<1x16x128xbf16> to vector<16x128xbf16>
    %cst = arith.constant dense<0.000000e+00> : vector<16x128xf32>
    %3 = tpu.matmul %0, %2, %cst {dimension_numbers = #tpu.dot_dimension_numbers<[1], [0], [0], [1], [0, 0, 1, 1], [], []>} : vector<16x16xbf16>, vector<16x128xbf16>, vector<16x128xf32> -> vector<16x128xf32>
    %c0_4 = arith.constant 0 : index
    %c0_5 = arith.constant 0 : index
    %4 = vector.load %arg3[%c0_4, %c0_5] : memref<8x128xf32, #tpu.memory_space<vmem>>, vector<1x128xf32>
    %5 = vector.broadcast %4 : vector<1x128xf32> to vector<16x128xf32>
    %6 = arith.addf %3, %5 : vector<16x128xf32>
    %cst_6 = arith.constant 0.000000e+00 : f32
    %7 = vector.broadcast %cst_6 : f32 to vector<16x128xf32>
    %8 = arith.maximumf %6, %7 : vector<16x128xf32>
    %9 = arith.truncf %8 : vector<16x128xf32> to vector<16x128xbf16>
    %c1 = arith.constant 1 : index
    %c0_7 = arith.constant 0 : index
    %c0_8 = arith.constant 0 : index
    %10 = vector.load %arg2[%c1, %c0_7, %c0_8] : memref<3x128x128xbf16, #tpu.memory_space<vmem>>, vector<1x128x128xbf16>
    %11 = vector.shape_cast %10 : vector<1x128x128xbf16> to vector<128x128xbf16>
    %cst_9 = arith.constant dense<0.000000e+00> : vector<16x128xf32>
    %12 = tpu.matmul %9, %11, %cst_9 {dimension_numbers = #tpu.dot_dimension_numbers<[1], [0], [0], [1], [0, 0, 1, 1], [], []>} : vector<16x128xbf16>, vector<128x128xbf16>, vector<16x128xf32> -> vector<16x128xf32>
    %c1_10 = arith.constant 1 : index
    %c0_11 = arith.constant 0 : index
    %13 = vector.load %arg3[%c1_10, %c0_11] : memref<8x128xf32, #tpu.memory_space<vmem>>, vector<1x128xf32>
    %14 = vector.broadcast %13 : vector<1x128xf32> to vector<16x128xf32>
    %15 = arith.addf %12, %14 : vector<16x128xf32>
    %cst_12 = arith.constant 0.000000e+00 : f32
    %16 = vector.broadcast %cst_12 : f32 to vector<16x128xf32>
    %17 = arith.maximumf %15, %16 : vector<16x128xf32>
    %18 = arith.truncf %17 : vector<16x128xf32> to vector<16x128xbf16>
    %c2 = arith.constant 2 : index
    %c0_13 = arith.constant 0 : index
    %c0_14 = arith.constant 0 : index
    %19 = vector.load %arg2[%c2, %c0_13, %c0_14] : memref<3x128x128xbf16, #tpu.memory_space<vmem>>, vector<1x128x128xbf16>
    %20 = vector.shape_cast %19 : vector<1x128x128xbf16> to vector<128x128xbf16>
    %cst_15 = arith.constant dense<0.000000e+00> : vector<16x128xf32>
    %21 = tpu.matmul %18, %20, %cst_15 {dimension_numbers = #tpu.dot_dimension_numbers<[1], [0], [0], [1], [0, 0, 1, 1], [], []>} : vector<16x128xbf16>, vector<128x128xbf16>, vector<16x128xf32> -> vector<16x128xf32>
    %c2_16 = arith.constant 2 : index
    %c0_17 = arith.constant 0 : index
    %22 = vector.load %arg3[%c2_16, %c0_17] : memref<8x128xf32, #tpu.memory_space<vmem>>, vector<1x128xf32>
    %23 = vector.broadcast %22 : vector<1x128xf32> to vector<16x128xf32>
    %24 = arith.addf %21, %23 : vector<16x128xf32>
    %25 = vector.extract_strided_slice %24 {offsets = [0, 0], sizes = [16, 8], strides = [1, 1]} : vector<16x128xf32> to vector<16x8xf32>
    %c0_18 = arith.constant 0 : index
    %c0_19 = arith.constant 0 : index
    %26 = vector.load %arg4[%c0_18, %c0_19] : memref<16x8xf32, #tpu.memory_space<vmem>>, vector<16x8xf32>
    tpu.vector_store %arg4[%c0_18, %c0_19], %25 {strides = array<i32>} : memref<16x8xf32, #tpu.memory_space<vmem>>, vector<16x8xf32>,
    return
  }
  func.func @transform_0(%arg0: i32) -> (i32, i32) {
    %c0_i32 = arith.constant 0 : i32
    %c0_i32_0 = arith.constant 0 : i32
    return %arg0, %c0_i32 : i32, i32
  }
  func.func @transform_1(%arg0: i32) -> (i32, i32, i32) {
    %c0_i32 = arith.constant 0 : i32
    %c0_i32_0 = arith.constant 0 : i32
    %c0_i32_1 = arith.constant 0 : i32
    %c0_i32_2 = arith.constant 0 : i32
    return %c0_i32, %c0_i32_0, %c0_i32_1 : i32, i32, i32
  }
  func.func @transform_2(%arg0: i32) -> (i32, i32) {
    %c0_i32 = arith.constant 0 : i32
    %c0_i32_0 = arith.constant 0 : i32
    %c0_i32_1 = arith.constant 0 : i32
    return %c0_i32, %c0_i32_0 : i32, i32
  }
  func.func @transform_3(%arg0: i32) -> (i32, i32) {
    %c0_i32 = arith.constant 0 : i32
    %c0_i32_0 = arith.constant 0 : i32
    return %arg0, %c0_i32 : i32, i32
  }
}

</mosaic_0001>

<bundles_post_ra>
// kernel: tpu_custom_call.1
= control target key start
LH: loop header
LB: loop body
LE: loop exit
PB: predicated region body
PF: predicated region fallthrough
CT: control target
= control target key end

     0   :  { %8 = vsyncpa [#allocation3], 0  ;;  %s635_s0 = inlined_call_operand.hbm [shape: bf16[16,16], index: 0, kind: input, shape index: {}]   ;;  %s636_s1 = inlined_call_operand.hbm [shape: bf16[3,128,128], index: 1, kind: input, shape index: {}]   ;;  %s637_s2 = inlined_call_operand.hbm [shape: f32[8,128], index: 2, kind: input, shape index: {}]   ;;  %s638_s3 = inlined_call_operand.vmem [shape: f32[16,8], index: 3, kind: output, shape index: {}]  }
   0x1   :  { %9 = vsyncpa [#allocation5], 0  ;;  %s539_s12 = smov [#allocation4]   ;;  %s540_s14 = smov [#allocation2]  }
   0x2   :  { %s27_s13 = sshll.u32 %s539_s12, 4  ;;  %s15_s15 = sshll.u32 %s540_s14, 4  ;;  %s28_s13 = int_to_ptr.vmem [resolvable:$true] %s27_s13  ;;  %s566_s15 = int_to_ptr.vmem [resolvable:$true] %s15_s15 }
   0x3   :  { %s469_s18 = scalar_lea.hbm %s636_s1, 3072 }
   0x4   :  { %p470_p0 = scmp.ne.s32.totalorder %s636_s1, %s469_s18  ;;  %p473_p1 = scmp.lt.u32.totalorder %s469_s18, %s636_s1 }
   0x6   :  { %p475_p2 = pnand %p473_p1, %p470_p0 }
   0x8   :  { %478 = shalt.err (!%p475_p2)
}
   0x9   :  { %s479_s23 = scalar_lea.vmem %s28_s13, 3072  ;;  %p484_p4 = scmp.lt.s32.totalorder %s28_s13, %s28_s13 }
   0xa   :  { %p480_p3 = scmp.ne.s32.totalorder %s28_s13, %s479_s23  ;;  %p485_p5 = scmp.lt.s32.totalorder %s479_s23, %s479_s23 }
   0xc   :  { %p486_p6 = por %p485_p5, %p484_p4 }
   0xe   :  { %p487_p7 = pnand %p486_p6, %p480_p3 }
  0x10   :  { %490 = shalt.err (!%p487_p7)
}
  0x11   :  { %s541_s24 = smov 64   ;;  %s542_s25 = smov 4  }
  0x12   :  { %33 = dma.hbm_to_vmem [thread:$0]  %s636_s1, 3072, %s28_s13, [#allocation5], %s541_s24, %s541_s24, %s542_s25  }
  0x13   :  { %s491_s30 = scalar_lea.hbm %s635_s0, 128 }
  0x14   :  { %p492_p8 = scmp.ne.s32.totalorder %s635_s0, %s491_s30  ;;  %p495_p9 = scmp.lt.u32.totalorder %s491_s30, %s635_s0 }
  0x16   :  { %p497_p10 = pnand %p495_p9, %p492_p8 }
  0x18   :  { %500 = shalt.err (!%p497_p10)
}
  0x19   :  { %s501_s8 = scalar_lea.vmem %s566_s15, 128  ;;  %p506_p12 = scmp.lt.s32.totalorder %s566_s15, %s566_s15 }
  0x1a   :  { %p502_p11 = scmp.ne.s32.totalorder %s566_s15, %s501_s8  ;;  %p507_p13 = scmp.lt.s32.totalorder %s501_s8, %s501_s8 }
  0x1c   :  { %p508_p0 = por %p507_p13, %p506_p12 }
  0x1e   :  { %p509_p1 = pnand %p508_p0, %p502_p11 }
  0x20   :  { %512 = shalt.err (!%p509_p1)
}
  0x21   :  { %21 = dma.hbm_to_vmem [thread:$0]  %s635_s0, 128, %s566_s15, [#allocation3], %s541_s24, %s541_s24, %s542_s25  }
  0x22   :  { %s543_s10 = smov [#allocation6]   ;;  %s513_s14 = scalar_lea.hbm %s637_s2, 128 }
  0x23   :  { %s40_s11 = sshll.u32 %s543_s10, 4  ;;  %p514_p2 = scmp.ne.s32.totalorder %s637_s2, %s513_s14  ;;  %s41_s11 = int_to_ptr.vmem [resolvable:$true] %s40_s11 }
  0x24   :  { %p517_p3 = scmp.lt.u32.totalorder %s513_s14, %s637_s2 }
  0x26   :  { %p519_p4 = pnand %p517_p3, %p514_p2 }
  0x28   :  { %522 = shalt.err (!%p519_p4)
}
  0x29   :  { %s523_s20 = scalar_lea.vmem %s41_s11, 128  ;;  %p528_p6 = scmp.lt.s32.totalorder %s41_s11, %s41_s11 }
  0x2a   :  { %p524_p5 = scmp.ne.s32.totalorder %s41_s11, %s523_s20  ;;  %p529_p7 = scmp.lt.s32.totalorder %s523_s20, %s523_s20 }
  0x2c   :  { %p530_p8 = por %p529_p7, %p528_p6 }
  0x2e   :  { %p531_p9 = pnand %p530_p8, %p524_p5 }
  0x30   :  { %534 = shalt.err (!%p531_p9)
}
  0x31   :  { %43 = dma.hbm_to_vmem [thread:$0]  %s637_s2, 128, %s41_s11, [#allocation5]  }
  0x32   :  { %535 = dma.done.wait [#allocation3], 128  }
  0x33   :  { %536 = vsyncadd [#allocation3], 4294967168 }
  0x34   :  { %537 = dma.done.wait [#allocation5], 3200  }
  0x35   :  { %538 = vsyncadd [#allocation5], 4294964096  ;;  %v544_v0 = vmov 0.0   ;;  %vm545_vm0 = vmmov 0   ;;  %v451_v1 = vld [vmem:[#allocation4] sm:$0xff]   ;;  %v452_v2 = vld [vmem:[#allocation2] sm:$0xff]  }
  0x36   :  { %398 = vmatprep.subr.bf16.mxu0 %v544_v0  ;;  %400 = vmatprep.mubr.msk.bf16.mxu0 %vm545_vm0, %v544_v0  ;;  %vm74_vm1 = vcmask 130048   ;;  %v453_v3 = vld [vmem:[#allocation4 + $0x40] sm:$0xff]   ;;  %v454_v4 = vld [vmem:[#allocation4 + $0x48] sm:$0xff]   ;;  %v455_v5 = vld [vmem:[#allocation4 + $0x50] sm:$0xff]   ;;  %vm347_vm2 = vcmask 64512  }
  0x37   :  { %404 = vmatprep.subr.bf16.mxu1 %v544_v0  ;;  %420 = vmatprep.mubr.msk.bf16.mxu1 %vm545_vm0, %v544_v0  ;;  %v456_v6 = vld [vmem:[#allocation4 + $0x58] sm:$0xff]   ;;  %v457_v7 = vld [vmem:[#allocation4 + $0x60] sm:$0xff]   ;;  %v458_v8 = vld [vmem:[#allocation4 + $0x68] sm:$0xff]  }
  0x38   :  { %399 = vmatpush3.bf16.msra.mxu0 %v451_v1  ;;  %405 = vmatpush3.bf16.msra.mxu1 %v453_v3  ;;  %v459_v9 = vld [vmem:[#allocation4 + $0x70] sm:$0xff]   ;;  %v460_v10 = vld [vmem:[#allocation4 + $0x78] sm:$0xff]   ;;  %v461_v11 = vld [vmem:[#allocation4 + $0x80] sm:$0xff]  }
  0x39   :  { %424 = vmatprep.subr.bf16.mxu0 %v544_v0  ;;  %406 = vmatprep.subr.bf16.mxu1 %v544_v0  ;;  %v462_v12 = vld [vmem:[#allocation4 + $0x88] sm:$0xff]   ;;  %v463_v13 = vld [vmem:[#allocation4 + $0x90] sm:$0xff]   ;;  %v464_v14 = vld [vmem:[#allocation4 + $0x98] sm:$0xff]  }
  0x3a   :  { %v465_v15 = vld [vmem:[#allocation4 + $0xa0] sm:$0xff]   ;;  %v466_v16 = vld [vmem:[#allocation4 + $0xa8] sm:$0xff]   ;;  %v467_v27 = vld [vmem:[#allocation4 + $0xb0] sm:$0xff]  }
  0x3b   :  { %401 = vmatmul.mubr.msk.bf16.vlgmr.msra.gmra.mrb[0].mxu0 %vm74_vm1, %v452_v2  ;;  %v356_v17 = vld [vmem:[#allocation6] ss:$0 sm:$0xff]  ;;  %v468_v28 = vld [vmem:[#allocation4 + $0xb8] sm:$0xff]   ;;  %v360_v29 = vld [vmem:[#allocation6 + $0x1] ss:$0 sm:$0xff] }
  0x3c   :  { %440 = vmatprep.mubr.msk.bf16.mxu0 %vm545_vm0, %v544_v0  ;;  %407 = vmatpush3.bf16.msra.mxu1 %v454_v4  ;;  %v369_v39 = vld [vmem:[#allocation6 + $0x2] ss:$0 sm:$0xff] }
  0x3d   :  { %408 = vmatprep.subr.bf16.mxu1 %v544_v0  ;;  %425 = vmatpush3.bf16.msra.mxu0 %v461_v11 }
  0x3e   :  { %426 = vmatprep.subr.bf16.mxu0 %v544_v0 }
  0x40   :  { %409 = vmatpush3.bf16.msra.mxu1 %v455_v5 }
  0x41   :  { %410 = vmatprep.subr.bf16.mxu1 %v544_v0  ;;  %427 = vmatpush3.bf16.msra.mxu0 %v462_v12 }
  0x42   :  { %428 = vmatprep.subr.bf16.mxu0 %v544_v0 }
  0x44   :  { %411 = vmatpush3.bf16.msra.mxu1 %v456_v6 }
  0x45   :  { %412 = vmatprep.subr.bf16.mxu1 %v544_v0  ;;  %429 = vmatpush3.bf16.msra.mxu0 %v463_v13 }
  0x46   :  { %430 = vmatprep.subr.bf16.mxu0 %v544_v0 }
  0x48   :  { %413 = vmatpush3.bf16.msra.mxu1 %v457_v7 }
  0x49   :  { %414 = vmatprep.subr.bf16.mxu1 %v544_v0  ;;  %431 = vmatpush3.bf16.msra.mxu0 %v464_v14 }
  0x4a   :  { %432 = vmatprep.subr.bf16.mxu0 %v544_v0 }
  0x4c   :  { %415 = vmatpush3.bf16.msra.mxu1 %v458_v8 }
  0x4d   :  { %416 = vmatprep.subr.bf16.mxu1 %v544_v0  ;;  %433 = vmatpush3.bf16.msra.mxu0 %v465_v15 }
  0x4e   :  { %434 = vmatprep.subr.bf16.mxu0 %v544_v0 }
  0x50   :  { %417 = vmatpush3.bf16.msra.mxu1 %v459_v9 }
  0x51   :  { %418 = vmatprep.subr.bf16.mxu1 %v544_v0  ;;  %435 = vmatpush3.bf16.msra.mxu0 %v466_v16 }
  0x52   :  { %436 = vmatprep.subr.bf16.mxu0 %v544_v0 }
  0x54   :  { %419 = vmatpush3.bf16.msra.mxu1 %v460_v10 }
  0x55   :  { %437 = vmatpush3.bf16.msra.mxu0 %v467_v27 }
  0x56   :  { %438 = vmatprep.subr.bf16.mxu0 %v544_v0 }
  0x59   :  { %439 = vmatpush3.bf16.msra.mxu0 %v468_v28 }
 0x10e   :  { %v112_v18 = vpop.f32.mrb[0].mxu0 }
 0x10f   :  { %v113_v19 = vadd.f32 %v356_v17, %v112_v18  ;;  %v402_v20 = vpop.f32.mrb[1].mxu0 }
 0x110   :  { %v115_v21 = vpop.f32.mrb[2].mxu0 }
 0x111   :  { %v116_v22 = vadd.f32 %v356_v17, %v115_v21  ;;  %v403_v23 = vpop.f32.mrb[3].mxu0  ;;  %v119_v24 = vmax.f32 %v113_v19, 0.0 }
 0x113   :  { %v120_v25 = vmax.f32 %v116_v22, 0.0 }
 0x115   :  { %v121_v26 = vpack.c.bf16 %v120_v25, %v119_v24 }
 0x117   :  { %421 = vmatmul.mubr.bf16.vlgmr.msra.gmra.mrb[0].mxu1 %v121_v26 }
 0x1ea   :  { %v226_v30 = vpop.f32.mrb[0].mxu1 }
 0x1eb   :  { %v227_v31 = vadd.f32 %v360_v29, %v226_v30  ;;  %v422_v32 = vpop.f32.mrb[1].mxu1 }
 0x1ec   :  { %v229_v33 = vpop.f32.mrb[2].mxu1 }
 0x1ed   :  { %v230_v34 = vadd.f32 %v360_v29, %v229_v33  ;;  %v423_v35 = vpop.f32.mrb[3].mxu1  ;;  %v233_v36 = vmax.f32 %v227_v31, 0.0 }
 0x1ef   :  { %v234_v37 = vmax.f32 %v230_v34, 0.0 }
 0x1f1   :  { %v235_v38 = vpack.c.bf16 %v234_v37, %v233_v36 }
 0x1f3   :  { %441 = vmatmul.mubr.bf16.vlgmr.msra.gmra.mrb[4].mxu0 %v235_v38 }
 0x2c6   :  { %v340_v40 = vpop.f32.mrb[4].mxu0 }
 0x2c7   :  { %v341_v41 = vadd.f32 %v369_v39, %v340_v40  ;;  %v442_v42 = vpop.f32.mrb[5].mxu0 }
 0x2c8   :  { %v343_v43 = vpop.f32.mrb[6].mxu0 }
 0x2c9   :  { %348 = vst.msk [vmem:[%s638_s3] sm:$0xff] %vm347_vm2, %v341_v41  ;;  %v344_v44 = vadd.f32 %v369_v39, %v343_v43  ;;  %v443_v45 = vpop.f32.mrb[7].mxu0 }
 0x2cb   :  { %349 = vst.msk [vmem:[%s638_s3 + $0x8] sm:$0xff] %vm347_vm2, %v344_v44 }
 0x2cc   :  { %354 = vsyncpa [#allocation3], 1 }
 0x2cd   :  { %355 = vsyncpa [#allocation5], 1 }

</bundles_post_ra>
